<compile_context>
chip_gen: v5e
topology: v5e:2x2
jax: 0.10.0
libtpu: 0.0.40
codegen_flags: <defaults>
</compile_context>

<pallas_src>
import jax
import jax.numpy as jnp
from jax.experimental import pallas as pl
from jax.experimental.pallas import tpu as pltpu


def skipgram_kernel(emb_ref, w_ref, b_ref, out_ref):
    # emb_ref: (TB, Dp)  gathered embedding rows (compute dtype)
    # w_ref:   (Dp, TV)  transposed Linear-weight tile (compute dtype)
    # b_ref:   (1,  TV)  bias tile (f32)
    # out_ref: (TB, TV)  logits tile (f32)
    out_ref[...] = (
        jnp.dot(emb_ref[...], w_ref[...], preferred_element_type=jnp.float32)
        + b_ref[...]
    ).astype(out_ref.dtype)


def _round_up(x, m):
    return (x + m - 1) // m * m


# Rows per native sublane tile, by element size (f32 -> 8, bf16 -> 16, 8-bit -> 32).
_SUBLANE = {4: 8, 2: 16, 1: 32}


def _skipgram_pallas(embeds_p, w_t_p, bias_p, *, TB, TV, Dp, nv, nb, vmem_limit):
    """pallas_call wrapper; all tiling params are static Python ints."""
    w_spec_kwargs = {}
    if nv >= 3:
        # Deeper pipelining on the dominant (weight) stream.
        w_spec_kwargs["pipeline_mode"] = pl.Buffered(3)

    grid_spec = pltpu.PrefetchScalarGridSpec(
        num_scalar_prefetch=0,
        # Vocab axis OUTER, batch axis INNER: the weight/bias block index is
        # constant across the inner axis, so W is streamed from HBM once.
        grid=(nv, nb),
        in_specs=[
            pl.BlockSpec((TB, Dp), lambda j, i: (i, 0)),                   # acts
            pl.BlockSpec((Dp, TV), lambda j, i: (0, j), **w_spec_kwargs),  # W.T
            pl.BlockSpec((1, TV), lambda j, i: (0, j)),                    # bias
        ],
        out_specs=pl.BlockSpec((TB, TV), lambda j, i: (i, j)),
    )

    return pl.pallas_call(
        skipgram_kernel,
        out_shape=jax.ShapeDtypeStruct((TB * nb, TV * nv), jnp.float32),
        grid_spec=grid_spec,
        compiler_params=pltpu.CompilerParams(
            # Shard the (outer) vocab axis across TensorCores on v7x so each
            # core streams a disjoint slice of W; batch axis stays arbitrary.
            dimension_semantics=("parallel", "arbitrary"),
            vmem_limit_bytes=vmem_limit,
        ),
    )(embeds_p, w_t_p, bias_p)


class PallasSkipGram:
    """Pallas-TPU forward of the PyTorch SkipGram: logits = Emb(ids) @ W.T + b."""

    def __init__(self, emb_table, w, bias, *, tv=2048, tb=256,
                 compute_dtype=jnp.bfloat16):
        V, D = emb_table.shape
        assert w.shape == (V, D)
        assert bias.shape == (V,)

        itemsize = jnp.dtype(compute_dtype).itemsize
        sub = _SUBLANE.get(itemsize, 8)

        Dp = _round_up(D, 128)                 # lane-aligned contraction dim
        TV = min(tv, _round_up(V, 128))        # lane-aligned vocab tile
        Vp = _round_up(V, TV)

        # ---- One-time parameter prep (hoisted out of the per-call path) ----
        # Pre-pad + pre-cast the embedding table so the per-call gather already
        # yields lane-aligned rows in the MXU streaming dtype.
        self.emb_table_p = (jnp.zeros((V, Dp), compute_dtype)
                            .at[:, :D].set(emb_table.astype(compute_dtype)))
        # Transpose + pad + cast W exactly once; it is the dominant HBM stream.
        self.w_t_p = (jnp.zeros((Dp, Vp), compute_dtype)
                      .at[:D, :V].set(w.T.astype(compute_dtype)))
        # Bias (and accumulation / logits) stay f32.
        self.bias_p = (jnp.zeros((1, Vp), jnp.float32)
                       .at[0, :V].set(bias.astype(jnp.float32)))

        self.V, self.D, self.Dp, self.TV, self.Vp = V, D, Dp, TV, Vp
        self.tb, self.sub, self.itemsize = tb, sub, itemsize
        self.compute_dtype = compute_dtype
        self._fwd_cache = {}

    def _build_forward(self, B):
        Dp, TV, Vp, V = self.Dp, self.TV, self.Vp, self.V
        sub, itemsize = self.sub, self.itemsize
        compute_dtype = self.compute_dtype

        Bp_min = _round_up(B, sub)
        # If the full activation block fits comfortably in VMEM, use a single
        # batch block (nb == 1) so it is DMA'd once instead of nv times.
        if Bp_min * Dp * itemsize <= 4 * 1024 * 1024:
            TB = Bp_min
        else:
            TB = min(_round_up(self.tb, sub), Bp_min)
        Bp = _round_up(B, TB)
        nb = Bp // TB
        nv = Vp // TV

        # VMEM budget from the actual tiles (double-buffered act/bias/out,
        # 2- or 3-buffered weight), capped at 48 MiB for v7x's 64 MiB VMEM.
        w_bufs = 3 if nv >= 3 else 2
        est = (2 * TB * Dp * itemsize          # activation buffers
               + w_bufs * Dp * TV * itemsize   # weight buffers
               + 2 * TV * 4                    # bias buffers
               + 2 * TB * TV * 4)              # output buffers
        vmem_limit = int(min(48 * 1024 * 1024, max(2 * est, 16 * 1024 * 1024)))

        emb_table_p, w_t_p, bias_p = self.emb_table_p, self.w_t_p, self.bias_p

        def forward(ids):
            # XLA gather -> dense (B, Dp) activation block for the MXU
            # (rows are already padded/cast in the pre-prepared table).
            embeds = emb_table_p[ids]
            if Bp != B:
                embeds = jnp.zeros((Bp, Dp), compute_dtype).at[:B].set(embeds)
            out_p = _skipgram_pallas(embeds, w_t_p, bias_p,
                                     TB=TB, TV=TV, Dp=Dp, nv=nv, nb=nb,
                                     vmem_limit=vmem_limit)
            if Bp == B and Vp == V:
                return out_p               # already exact: skip the HBM re-copy
            return out_p[:B, :V]

        return jax.jit(forward)

    def __call__(self, ids):
        B = ids.shape[0]
        fwd = self._fwd_cache.get(B)
        if fwd is None:
            fwd = self._fwd_cache[B] = self._build_forward(B)
        return fwd(ids)


if __name__ == "__main__":
    # Small shapes consistent with the module (default embedding_dim=300),
    # deliberately non-128-aligned to exercise the padding paths.
    vocab_size = 500
    embedding_dim = 300
    batch = 8

    key = jax.random.PRNGKey(0)
    k_emb, k_w, k_b, k_ids = jax.random.split(key, 4)

    emb_table = jax.random.normal(k_emb, (vocab_size, embedding_dim), jnp.float32)
    w = jax.random.normal(k_w, (vocab_size, embedding_dim), jnp.float32) * 0.05
    b = jax.random.normal(k_b, (vocab_size,), jnp.float32) * 0.05
    ids = jax.random.randint(k_ids, (batch,), 0, vocab_size, jnp.int32)

    # Pure-JAX reference (matches the PyTorch module's forward).
    ref = emb_table[ids] @ w.T + b

    # f32 escape hatch: tight match against the reference.
    model_f32 = PallasSkipGram(emb_table, w, b, compute_dtype=jnp.float32)
    out_f32 = jax.block_until_ready(model_f32(ids))
    assert out_f32.shape == (batch, vocab_size)
    assert jnp.allclose(out_f32, ref, atol=1e-4, rtol=1e-4)

    # Default bf16-streaming path (f32 accumulation, f32 bias/logits).
    model_bf16 = PallasSkipGram(emb_table, w, b)
    out_bf16 = jax.block_until_ready(model_bf16(ids))
    assert out_bf16.shape == (batch, vocab_size)
    assert jnp.allclose(out_bf16, ref, atol=5e-2, rtol=5e-2)

    print("KERNEL_OK")
</pallas_src>

<mosaic_0001>
module attributes {stable_mosaic.version = 11 : i64} {
  func.func @skipgram_kernel(%arg0: i32, %arg1: i32, %arg2: memref<8x384xf32, #tpu.memory_space<vmem>>, %arg3: memref<384x512xf32, #tpu.memory_space<vmem>>, %arg4: memref<1x512xf32, #tpu.memory_space<vmem>>, %arg5: memref<8x512xf32, #tpu.memory_space<vmem>>) attributes {dimension_semantics = [#tpu.dimension_semantics<parallel>, #tpu.dimension_semantics<arbitrary>], iteration_bounds = array<i64: 1, 1>, scalar_prefetch = 0 : i64, scratch_operands = 0 : i64, tpu.core_type = #tpu.core_type<tc>, window_params = [{transform_indices = @transform_0, window_bounds = array<i64: 8, 384>}, {transform_indices = @transform_1, window_bounds = array<i64: 384, 512>}, {transform_indices = @transform_2, window_bounds = array<i64: 1, 512>}, {transform_indices = @transform_3, window_bounds = array<i64: 8, 512>}]} {
    %c0 = arith.constant 0 : index
    %c0_0 = arith.constant 0 : index
    %0 = vector.load %arg2[%c0, %c0_0] : memref<8x384xf32, #tpu.memory_space<vmem>>, vector<8x384xf32>
    %c0_1 = arith.constant 0 : index
    %c0_2 = arith.constant 0 : index
    %1 = vector.load %arg3[%c0_1, %c0_2] : memref<384x512xf32, #tpu.memory_space<vmem>>, vector<384x512xf32>
    %cst = arith.constant dense<0.000000e+00> : vector<8x512xf32>
    %2 = tpu.matmul %0, %1, %cst {dimension_numbers = #tpu.dot_dimension_numbers<[1], [0], [0], [1], [0, 0, 1, 1], [], []>} : vector<8x384xf32>, vector<384x512xf32>, vector<8x512xf32> -> vector<8x512xf32>
    %c0_3 = arith.constant 0 : index
    %c0_4 = arith.constant 0 : index
    %3 = vector.load %arg4[%c0_3, %c0_4] : memref<1x512xf32, #tpu.memory_space<vmem>>, vector<1x512xf32>
    %4 = vector.broadcast %3 : vector<1x512xf32> to vector<8x512xf32>
    %5 = arith.addf %2, %4 : vector<8x512xf32>
    %c0_5 = arith.constant 0 : index
    %c0_6 = arith.constant 0 : index
    %6 = vector.load %arg5[%c0_5, %c0_6] : memref<8x512xf32, #tpu.memory_space<vmem>>, vector<8x512xf32>
    tpu.vector_store %arg5[%c0_5, %c0_6], %5 {strides = array<i32>} : memref<8x512xf32, #tpu.memory_space<vmem>>, vector<8x512xf32>,
    return
  }
  func.func @transform_0(%arg0: i32, %arg1: i32) -> (i32, i32) {
    %c0_i32 = arith.constant 0 : i32
    %c0_i32_0 = arith.constant 0 : i32
    return %arg1, %c0_i32 : i32, i32
  }
  func.func @transform_1(%arg0: i32, %arg1: i32) -> (i32, i32) {
    %c0_i32 = arith.constant 0 : i32
    %c0_i32_0 = arith.constant 0 : i32
    return %c0_i32, %arg0 : i32, i32
  }
  func.func @transform_2(%arg0: i32, %arg1: i32) -> (i32, i32) {
    %c0_i32 = arith.constant 0 : i32
    %c0_i32_0 = arith.constant 0 : i32
    return %c0_i32, %arg0 : i32, i32
  }
  func.func @transform_3(%arg0: i32, %arg1: i32) -> (i32, i32) {
    %c0_i32 = arith.constant 0 : i32
    return %arg1, %arg0 : i32, i32
  }
}

</mosaic_0001>

<bundles_post_ra>
// kernel: forward.1
= control target key start
LH: loop header
LB: loop body
LE: loop exit
PB: predicated region body
PF: predicated region fallthrough
CT: control target
= control target key end

     0   :  { %8 = vsyncpa [#allocation3], 0  ;;  %s613_s0 = inlined_call_operand.vmem [shape: f32[8,384], index: 0, kind: input, shape index: {}]   ;;  %s614_s1 = inlined_call_operand.hbm [shape: f32[384,512], index: 1, kind: input, shape index: {}]   ;;  %s615_s2 = inlined_call_operand.vmem [shape: f32[1,512], index: 2, kind: input, shape index: {}]   ;;  %s616_s3 = inlined_call_operand.hbm [shape: f32[8,512], index: 3, kind: output, shape index: {}]  }
   0x1   :  { %9 = vsyncpa [#allocation4], 0  ;;  %s16_s14 = sshll.u32 %s614_s1, 4  ;;  %s553_s15 = smov [#allocation2]   ;;  %s17_s14 = int_to_ptr.hbm [resolvable:$true] %s16_s14 }
   0x2   :  { %s18_s16 = sshll.u32 %s553_s15, 4  ;;  %s554_s17 = smov 512   ;;  %s19_s16 = int_to_ptr.vmem [resolvable:$true] %s18_s16 }
   0x3   :  { %s555_s18 = smov 32  }
   0x4   :  { %24 = dma.hbm_to_vmem [thread:$0]  %s17_s14, 24576, %s19_s16, [#allocation3], %s554_s17, %s554_s17, %s555_s18  }
   0x5   :  { %549 = dma.done.wait [#allocation3], 24576  }
   0x6   :  { %550 = vsyncadd [#allocation3], 4294942720  ;;  %v222_v0 = vld [vmem:[#allocation2 + $0x5e0] sm:$0xff]  ;;  %v95_v3 = vld [vmem:[#allocation2 + $0x1e8] sm:$0xff]  ;;  %s487_s28 = sshll.u32 %s616_s3, 4  ;;  %s488_s28 = int_to_ptr.hbm [resolvable:$true] %s487_s28 }
   0x7   :  { %v94_v1 = vld [vmem:[#allocation2 + $0x1e0] sm:$0xff]  ;;  %276 = vmatpush.msra.mxu2 %v222_v0  ;;  %296 = vmatpush.msra.mxu3 %v95_v3  ;;  %v91_v7 = vld [vmem:[#allocation2 + $0x1c8] sm:$0xff]  ;;  %v96_v62 = vld [vmem:[#allocation2 + $0x1f0] sm:$0xff] }
   0x8   :  { %v218_v2 = vld [vmem:[#allocation2 + $0x5c0] sm:$0xff]  ;;  %236 = vmatpush.msra.mxu0 %v94_v1  ;;  %v87_v10 = vld [vmem:[#allocation2 + $0x1a8] sm:$0xff]  ;;  %v160_v1 = vld [vmem:[#allocation2 + $0x3f0] sm:$0xff] }
   0x9   :  { %v90_v4 = vld [vmem:[#allocation2 + $0x1c0] sm:$0xff]  ;;  %277 = vmatpush.msra.mxu2 %v218_v2  ;;  %297 = vmatpush.msra.mxu3 %v91_v7  ;;  %v83_v14 = vld [vmem:[#allocation2 + $0x188] sm:$0xff]  ;;  %v92_v2 = vld [vmem:[#allocation2 + $0x1d0] sm:$0xff] }
   0xa   :  { %v158_v5 = vld [vmem:[#allocation2 + $0x3e0] sm:$0xff]  ;;  %237 = vmatpush.msra.mxu0 %v90_v4  ;;  %v79_v18 = vld [vmem:[#allocation2 + $0x168] sm:$0xff]  ;;  %v156_v7 = vld [vmem:[#allocation2 + $0x3d0] sm:$0xff] }
   0xb   :  { %256 = vmatpush.msra.mxu1 %v158_v5  ;;  %v214_v6 = vld [vmem:[#allocation2 + $0x5a0] sm:$0xff]  ;;  %298 = vmatpush.msra.mxu3 %v87_v10  ;;  %v75_v22 = vld [vmem:[#allocation2 + $0x148] sm:$0xff]  ;;  %v84_v10 = vld [vmem:[#allocation2 + $0x190] sm:$0xff] }
   0xc   :  { %v86_v8 = vld [vmem:[#allocation2 + $0x1a0] sm:$0xff]  ;;  %278 = vmatpush.msra.mxu2 %v214_v6  ;;  %v71_v26 = vld [vmem:[#allocation2 + $0x128] sm:$0xff]  ;;  %v88_v6 = vld [vmem:[#allocation2 + $0x1b0] sm:$0xff] }
   0xd   :  { %v154_v9 = vld [vmem:[#allocation2 + $0x3c0] sm:$0xff]  ;;  %238 = vmatpush.msra.mxu0 %v86_v8  ;;  %299 = vmatpush.msra.mxu3 %v83_v14  ;;  %v67_v30 = vld [vmem:[#allocation2 + $0x108] sm:$0xff]  ;;  %v80_v14 = vld [vmem:[#allocation2 + $0x170] sm:$0xff] }
   0xe   :  { %257 = vmatpush.msra.mxu1 %v154_v9  ;;  %v210_v11 = vld [vmem:[#allocation2 + $0x580] sm:$0xff]  ;;  %v63_v34 = vld [vmem:[#allocation2 + $0xe8] sm:$0xff] }
   0xf   :  { %v82_v12 = vld [vmem:[#allocation2 + $0x180] sm:$0xff]  ;;  %279 = vmatpush.msra.mxu2 %v210_v11  ;;  %300 = vmatpush.msra.mxu3 %v79_v18  ;;  %v59_v38 = vld [vmem:[#allocation2 + $0xc8] sm:$0xff]  ;;  %v152_v11 = vld [vmem:[#allocation2 + $0x3b0] sm:$0xff] }
  0x10   :  { %v150_v13 = vld [vmem:[#allocation2 + $0x3a0] sm:$0xff]  ;;  %239 = vmatpush.msra.mxu0 %v82_v12  ;;  %v55_v42 = vld [vmem:[#allocation2 + $0xa8] sm:$0xff]  ;;  %v76_v18 = vld [vmem:[#allocation2 + $0x150] sm:$0xff] }
  0x11   :  { %v146_v15 = vld [vmem:[#allocation2 + $0x380] sm:$0xff]  ;;  %258 = vmatpush.msra.mxu1 %v150_v13  ;;  %301 = vmatpush.msra.mxu3 %v75_v22  ;;  %v51_v46 = vld [vmem:[#allocation2 + $0x88] sm:$0xff]  ;;  %v72_v22 = vld [vmem:[#allocation2 + $0x130] sm:$0xff] }
  0x12   :  { %v206_v16 = vld [vmem:[#allocation2 + $0x560] sm:$0xff]  ;;  %v47_v50 = vld [vmem:[#allocation2 + $0x68] sm:$0xff] }
  0x13   :  { %v78_v17 = vld [vmem:[#allocation2 + $0x160] sm:$0xff]  ;;  %259 = vmatpush.msra.mxu1 %v146_v15  ;;  %280 = vmatpush.msra.mxu2 %v206_v16  ;;  %v43_v54 = vld [vmem:[#allocation2 + $0x48] sm:$0xff]  ;;  %v148_v15 = vld [vmem:[#allocation2 + $0x390] sm:$0xff] }
  0x14   :  { %v142_v19 = vld [vmem:[#allocation2 + $0x360] sm:$0xff]  ;;  %240 = vmatpush.msra.mxu0 %v78_v17  ;;  %302 = vmatpush.msra.mxu3 %v71_v26  ;;  %v39_v58 = vld [vmem:[#allocation2 + $0x28] sm:$0xff]  ;;  %v68_v26 = vld [vmem:[#allocation2 + $0x110] sm:$0xff] }
  0x15   :  { %v202_v20 = vld [vmem:[#allocation2 + $0x540] sm:$0xff]  ;;  %260 = vmatpush.msra.mxu1 %v142_v19  ;;  %v35_v63 = vld [vmem:[#allocation2 + $0x8] sm:$0xff]  ;;  %v144_v19 = vld [vmem:[#allocation2 + $0x370] sm:$0xff] }
  0x16   :  { %v74_v21 = vld [vmem:[#allocation2 + $0x140] sm:$0xff]  ;;  %281 = vmatpush.msra.mxu2 %v202_v20  ;;  %303 = vmatpush.msra.mxu3 %v67_v30  ;;  %v159_v0 = vld [vmem:[#allocation2 + $0x3e8] sm:$0xff]  ;;  %v64_v30 = vld [vmem:[#allocation2 + $0xf0] sm:$0xff] }
  0x17   :  { %v138_v23 = vld [vmem:[#allocation2 + $0x340] sm:$0xff]  ;;  %241 = vmatpush.msra.mxu0 %v74_v21  ;;  %v155_v4 = vld [vmem:[#allocation2 + $0x3c8] sm:$0xff] }
  0x18   :  { %v198_v24 = vld [vmem:[#allocation2 + $0x520] sm:$0xff]  ;;  %261 = vmatpush.msra.mxu1 %v138_v23  ;;  %304 = vmatpush.msra.mxu3 %v63_v34  ;;  %v223_v5 = vld [vmem:[#allocation2 + $0x5e8] sm:$0xff]  ;;  %v140_v23 = vld [vmem:[#allocation2 + $0x350] sm:$0xff] }
  0x19   :  { %v70_v25 = vld [vmem:[#allocation2 + $0x120] sm:$0xff]  ;;  %282 = vmatpush.msra.mxu2 %v198_v24  ;;  %v151_v8 = vld [vmem:[#allocation2 + $0x3a8] sm:$0xff]  ;;  %v60_v34 = vld [vmem:[#allocation2 + $0xd0] sm:$0xff] }
  0x1a   :  { %v134_v27 = vld [vmem:[#allocation2 + $0x320] sm:$0xff]  ;;  %242 = vmatpush.msra.mxu0 %v70_v25  ;;  %305 = vmatpush.msra.mxu3 %v59_v38  ;;  %v219_v9 = vld [vmem:[#allocation2 + $0x5c8] sm:$0xff]  ;;  %v56_v38 = vld [vmem:[#allocation2 + $0xb0] sm:$0xff] }
  0x1b   :  { %v194_v28 = vld [vmem:[#allocation2 + $0x500] sm:$0xff]  ;;  %262 = vmatpush.msra.mxu1 %v134_v27  ;;  %v147_v12 = vld [vmem:[#allocation2 + $0x388] sm:$0xff]  ;;  %v136_v27 = vld [vmem:[#allocation2 + $0x330] sm:$0xff] }
  0x1c   :  { %v66_v29 = vld [vmem:[#allocation2 + $0x100] sm:$0xff]  ;;  %283 = vmatpush.msra.mxu2 %v194_v28  ;;  %306 = vmatpush.msra.mxu3 %v55_v42  ;;  %v215_v13 = vld [vmem:[#allocation2 + $0x5a8] sm:$0xff]  ;;  %v52_v42 = vld [vmem:[#allocation2 + $0x90] sm:$0xff] }
  0x1d   :  { %v130_v31 = vld [vmem:[#allocation2 + $0x300] sm:$0xff]  ;;  %243 = vmatpush.msra.mxu0 %v66_v29  ;;  %v143_v16 = vld [vmem:[#allocation2 + $0x368] sm:$0xff] }
  0x1e   :  { %v190_v32 = vld [vmem:[#allocation2 + $0x4e0] sm:$0xff]  ;;  %263 = vmatpush.msra.mxu1 %v130_v31  ;;  %307 = vmatpush.msra.mxu3 %v51_v46  ;;  %v211_v17 = vld [vmem:[#allocation2 + $0x588] sm:$0xff]  ;;  %v132_v31 = vld [vmem:[#allocation2 + $0x310] sm:$0xff] }
  0x1f   :  { %v62_v33 = vld [vmem:[#allocation2 + $0xe0] sm:$0xff]  ;;  %284 = vmatpush.msra.mxu2 %v190_v32  ;;  %v139_v20 = vld [vmem:[#allocation2 + $0x348] sm:$0xff]  ;;  %v48_v46 = vld [vmem:[#allocation2 + $0x70] sm:$0xff] }
  0x20   :  { %v126_v35 = vld [vmem:[#allocation2 + $0x2e0] sm:$0xff]  ;;  %244 = vmatpush.msra.mxu0 %v62_v33  ;;  %308 = vmatpush.msra.mxu3 %v47_v50  ;;  %v207_v21 = vld [vmem:[#allocation2 + $0x568] sm:$0xff]  ;;  %v44_v50 = vld [vmem:[#allocation2 + $0x50] sm:$0xff] }
  0x21   :  { %v186_v36 = vld [vmem:[#allocation2 + $0x4c0] sm:$0xff]  ;;  %264 = vmatpush.msra.mxu1 %v126_v35  ;;  %v135_v24 = vld [vmem:[#allocation2 + $0x328] sm:$0xff]  ;;  %v128_v35 = vld [vmem:[#allocation2 + $0x2f0] sm:$0xff] }
  0x22   :  { %v58_v37 = vld [vmem:[#allocation2 + $0xc0] sm:$0xff]  ;;  %285 = vmatpush.msra.mxu2 %v186_v36  ;;  %309 = vmatpush.msra.mxu3 %v43_v54  ;;  %v203_v25 = vld [vmem:[#allocation2 + $0x548] sm:$0xff]  ;;  %v40_v54 = vld [vmem:[#allocation2 + $0x30] sm:$0xff] }
  0x23   :  { %v122_v39 = vld [vmem:[#allocation2 + $0x2c0] sm:$0xff]  ;;  %245 = vmatpush.msra.mxu0 %v58_v37  ;;  %v131_v28 = vld [vmem:[#allocation2 + $0x308] sm:$0xff] }
  0x24   :  { %v182_v40 = vld [vmem:[#allocation2 + $0x4a0] sm:$0xff]  ;;  %265 = vmatpush.msra.mxu1 %v122_v39  ;;  %310 = vmatpush.msra.mxu3 %v39_v58  ;;  %v199_v29 = vld [vmem:[#allocation2 + $0x528] sm:$0xff]  ;;  %v124_v39 = vld [vmem:[#allocation2 + $0x2d0] sm:$0xff] }
  0x25   :  { %v54_v41 = vld [vmem:[#allocation2 + $0xa0] sm:$0xff]  ;;  %286 = vmatpush.msra.mxu2 %v182_v40  ;;  %v127_v32 = vld [vmem:[#allocation2 + $0x2e8] sm:$0xff]  ;;  %v36_v58 = vld [vmem:[#allocation2 + $0x10] sm:$0xff] }
  0x26   :  { %v118_v43 = vld [vmem:[#allocation2 + $0x2a0] sm:$0xff]  ;;  %246 = vmatpush.msra.mxu0 %v54_v41  ;;  %311 = vmatpush.msra.mxu3 %v35_v63  ;;  %v195_v33 = vld [vmem:[#allocation2 + $0x508] sm:$0xff] }
  0x27   :  { %v178_v44 = vld [vmem:[#allocation2 + $0x480] sm:$0xff]  ;;  %266 = vmatpush.msra.mxu1 %v118_v43  ;;  %v123_v36 = vld [vmem:[#allocation2 + $0x2c8] sm:$0xff]  ;;  %v120_v43 = vld [vmem:[#allocation2 + $0x2b0] sm:$0xff] }
  0x28   :  { %v50_v45 = vld [vmem:[#allocation2 + $0x80] sm:$0xff]  ;;  %287 = vmatpush.msra.mxu2 %v178_v44  ;;  %376 = vmatpush.msrb.mxu3 %v160_v1  ;;  %v191_v37 = vld [vmem:[#allocation2 + $0x4e8] sm:$0xff] }
  0x29   :  { %v114_v47 = vld [vmem:[#allocation2 + $0x280] sm:$0xff]  ;;  %247 = vmatpush.msra.mxu0 %v50_v45  ;;  %v119_v40 = vld [vmem:[#allocation2 + $0x2a8] sm:$0xff] }
  0x2a   :  { %v174_v48 = vld [vmem:[#allocation2 + $0x460] sm:$0xff]  ;;  %267 = vmatpush.msra.mxu1 %v114_v47  ;;  %377 = vmatpush.msrb.mxu3 %v156_v7  ;;  %v187_v41 = vld [vmem:[#allocation2 + $0x4c8] sm:$0xff]  ;;  %v116_v47 = vld [vmem:[#allocation2 + $0x290] sm:$0xff] }
  0x2b   :  { %v46_v49 = vld [vmem:[#allocation2 + $0x60] sm:$0xff]  ;;  %288 = vmatpush.msra.mxu2 %v174_v48  ;;  %v115_v44 = vld [vmem:[#allocation2 + $0x288] sm:$0xff] }
  0x2c   :  { %v110_v51 = vld [vmem:[#allocation2 + $0x260] sm:$0xff]  ;;  %248 = vmatpush.msra.mxu0 %v46_v49  ;;  %378 = vmatpush.msrb.mxu3 %v152_v11  ;;  %v183_v45 = vld [vmem:[#allocation2 + $0x4a8] sm:$0xff]  ;;  %v216_v11 = vld [vmem:[#allocation2 + $0x5b0] sm:$0xff] }
  0x2d   :  { %v170_v52 = vld [vmem:[#allocation2 + $0x440] sm:$0xff]  ;;  %268 = vmatpush.msra.mxu1 %v110_v51  ;;  %v111_v48 = vld [vmem:[#allocation2 + $0x268] sm:$0xff]  ;;  %v112_v51 = vld [vmem:[#allocation2 + $0x270] sm:$0xff] }
  0x2e   :  { %v42_v53 = vld [vmem:[#allocation2 + $0x40] sm:$0xff]  ;;  %289 = vmatpush.msra.mxu2 %v170_v52  ;;  %379 = vmatpush.msrb.mxu3 %v148_v15  ;;  %v179_v49 = vld [vmem:[#allocation2 + $0x488] sm:$0xff]  ;;  %v212_v15 = vld [vmem:[#allocation2 + $0x590] sm:$0xff] }
  0x2f   :  { %v106_v55 = vld [vmem:[#allocation2 + $0x240] sm:$0xff]  ;;  %249 = vmatpush.msra.mxu0 %v42_v53  ;;  %v107_v52 = vld [vmem:[#allocation2 + $0x248] sm:$0xff] }
  0x30   :  { %v166_v56 = vld [vmem:[#allocation2 + $0x420] sm:$0xff]  ;;  %269 = vmatpush.msra.mxu1 %v106_v55  ;;  %380 = vmatpush.msrb.mxu3 %v144_v19  ;;  %v175_v53 = vld [vmem:[#allocation2 + $0x468] sm:$0xff]  ;;  %v108_v55 = vld [vmem:[#allocation2 + $0x250] sm:$0xff] }
  0x31   :  { %v38_v57 = vld [vmem:[#allocation2 + $0x20] sm:$0xff]  ;;  %290 = vmatpush.msra.mxu2 %v166_v56  ;;  %v103_v56 = vld [vmem:[#allocation2 + $0x228] sm:$0xff]  ;;  %v141_v19 = vld [vmem:[#allocation2 + $0x358] sm:$0xff] }
  0x32   :  { %v102_v59 = vld [vmem:[#allocation2 + $0x220] sm:$0xff]  ;;  %250 = vmatpush.msra.mxu0 %v38_v57  ;;  %381 = vmatpush.msrb.mxu3 %v140_v23  ;;  %v171_v57 = vld [vmem:[#allocation2 + $0x448] sm:$0xff]  ;;  %v204_v23 = vld [vmem:[#allocation2 + $0x550] sm:$0xff] }
  0x33   :  { %v162_v60 = vld [vmem:[#allocation2 + $0x400] sm:$0xff]  ;;  %270 = vmatpush.msra.mxu1 %v102_v59  ;;  %v104_v59 = vld [vmem:[#allocation2 + $0x230] sm:$0xff]  ;;  %v167_v63 = vld [vmem:[#allocation2 + $0x428] sm:$0xff] }
  0x34   :  { %v34_v61 = vld [vmem:[#allocation2] sm:$0xff]  ;;  %291 = vmatpush.msra.mxu2 %v162_v60  ;;  %382 = vmatpush.msrb.mxu3 %v136_v27  ;;  %v583_v60 = vld [vmem:[%s613_s0 + $0x10] sm:$0xff]  ;;  %v596_v7 = vld [vmem:[%s613_s0 + $0x8] sm:$0xff] }
  0x35   :  { %251 = vmatpush.msra.mxu0 %v34_v61  ;;  %v98_v3 = vld [vmem:[#allocation2 + $0x200] sm:$0xff]  ;;  %v99_v61 = vld [vmem:[#allocation2 + $0x208] sm:$0xff]  ;;  %292 = vmatmul.f32.vlgmr.msra.gmra.mxu2 %v583_v60  ;;  %v200_v27 = vld [vmem:[#allocation2 + $0x530] sm:$0xff] }
  0x36   :  { %356 = vmatpush.msrb.mxu2 %v96_v62  ;;  %271 = vmatpush.msra.mxu1 %v98_v3  ;;  %v161_v62 = vld [vmem:[#allocation2 + $0x3f8] sm:$0xff]  ;;  %v588_v1 = vld [vmem:[%s613_s0] sm:$0xff] }
  0x37   :  { %316 = vmatpush.msrb.mxu0 %v159_v0  ;;  %383 = vmatpush.msrb.mxu3 %v132_v31  ;;  %v100_v0 = vld [vmem:[#allocation2 + $0x210] sm:$0xff]  ;;  %v157_v3 = vld [vmem:[#allocation2 + $0x3d8] sm:$0xff] }
  0x38   :  { %357 = vmatpush.msrb.mxu2 %v92_v2  ;;  %336 = vmatpush.msrb.mxu1 %v223_v5  ;;  %v224_v2 = vld [vmem:[#allocation2 + $0x5f0] sm:$0xff]  ;;  %v163_v5 = vld [vmem:[#allocation2 + $0x408] sm:$0xff] }
  0x39   :  { %317 = vmatpush.msrb.mxu0 %v155_v4  ;;  %384 = vmatpush.msrb.mxu3 %v128_v35  ;;  %v225_v4 = vld [vmem:[#allocation2 + $0x5f8] sm:$0xff]  ;;  %v196_v31 = vld [vmem:[#allocation2 + $0x510] sm:$0xff] }
  0x3a   :  { %358 = vmatpush.msrb.mxu2 %v88_v6  ;;  %337 = vmatpush.msrb.mxu1 %v219_v9  ;;  %v220_v6 = vld [vmem:[#allocation2 + $0x5d0] sm:$0xff]  ;;  %v97_v9 = vld [vmem:[#allocation2 + $0x1f8] sm:$0xff] }
  0x3b   :  { %318 = vmatpush.msrb.mxu0 %v151_v8  ;;  %385 = vmatpush.msrb.mxu3 %v124_v39  ;;  %v153_v8 = vld [vmem:[#allocation2 + $0x3b8] sm:$0xff]  ;;  %v192_v35 = vld [vmem:[#allocation2 + $0x4f0] sm:$0xff] }
  0x3c   :  { %359 = vmatpush.msrb.mxu2 %v84_v10  ;;  %338 = vmatpush.msrb.mxu1 %v215_v13  ;;  %v221_v10 = vld [vmem:[#allocation2 + $0x5d8] sm:$0xff]  ;;  %v188_v39 = vld [vmem:[#allocation2 + $0x4d0] sm:$0xff] }
  0x3d   :  { %319 = vmatpush.msrb.mxu0 %v147_v12  ;;  %386 = vmatpush.msrb.mxu3 %v120_v43  ;;  %v149_v12 = vld [vmem:[#allocation2 + $0x398] sm:$0xff]  ;;  %v184_v43 = vld [vmem:[#allocation2 + $0x4b0] sm:$0xff] }
  0x3e   :  { %360 = vmatpush.msrb.mxu2 %v80_v14  ;;  %339 = vmatpush.msrb.mxu1 %v211_v17  ;;  %v93_v13 = vld [vmem:[#allocation2 + $0x1d8] sm:$0xff] }
  0x3f   :  { %320 = vmatpush.msrb.mxu0 %v143_v16  ;;  %387 = vmatpush.msrb.mxu3 %v116_v47  ;;  %v217_v14 = vld [vmem:[#allocation2 + $0x5b8] sm:$0xff]  ;;  %v180_v47 = vld [vmem:[#allocation2 + $0x490] sm:$0xff] }
  0x40   :  { %361 = vmatpush.msrb.mxu2 %v76_v18  ;;  %340 = vmatpush.msrb.mxu1 %v207_v21  ;;  %v145_v16 = vld [vmem:[#allocation2 + $0x378] sm:$0xff] }
  0x41   :  { %321 = vmatpush.msrb.mxu0 %v139_v20  ;;  %388 = vmatpush.msrb.mxu3 %v112_v51  ;;  %v89_v17 = vld [vmem:[#allocation2 + $0x1b8] sm:$0xff]  ;;  %v208_v20 = vld [vmem:[#allocation2 + $0x570] sm:$0xff] }
  0x42   :  { %362 = vmatpush.msrb.mxu2 %v72_v22  ;;  %341 = vmatpush.msrb.mxu1 %v203_v25  ;;  %v213_v18 = vld [vmem:[#allocation2 + $0x598] sm:$0xff]  ;;  %v176_v51 = vld [vmem:[#allocation2 + $0x470] sm:$0xff] }
  0x43   :  { %322 = vmatpush.msrb.mxu0 %v135_v24  ;;  %389 = vmatpush.msrb.mxu3 %v108_v55  ;;  %v85_v21 = vld [vmem:[#allocation2 + $0x198] sm:$0xff]  ;;  %v172_v55 = vld [vmem:[#allocation2 + $0x450] sm:$0xff] }
  0x44   :  { %363 = vmatpush.msrb.mxu2 %v68_v26  ;;  %342 = vmatpush.msrb.mxu1 %v199_v29  ;;  %v209_v22 = vld [vmem:[#allocation2 + $0x578] sm:$0xff] }
  0x45   :  { %323 = vmatpush.msrb.mxu0 %v131_v28  ;;  %390 = vmatpush.msrb.mxu3 %v104_v59  ;;  %v81_v24 = vld [vmem:[#allocation2 + $0x178] sm:$0xff]  ;;  %v168_v59 = vld [vmem:[#allocation2 + $0x430] sm:$0xff] }
  0x46   :  { %364 = vmatpush.msrb.mxu2 %v64_v30  ;;  %343 = vmatpush.msrb.mxu1 %v195_v33  ;;  %v137_v25 = vld [vmem:[#allocation2 + $0x338] sm:$0xff] }
  0x47   :  { %324 = vmatpush.msrb.mxu0 %v127_v32  ;;  %391 = vmatpush.msrb.mxu3 %v100_v0  ;;  %v205_v26 = vld [vmem:[#allocation2 + $0x558] sm:$0xff]  ;;  %v164_v0 = vld [vmem:[#allocation2 + $0x410] sm:$0xff] }
  0x48   :  { %365 = vmatpush.msrb.mxu2 %v60_v34  ;;  %344 = vmatpush.msrb.mxu1 %v191_v37  ;;  %v77_v28 = vld [vmem:[#allocation2 + $0x158] sm:$0xff] }
  0x49   :  { %325 = vmatpush.msrb.mxu0 %v123_v36  ;;  %312 = vmatmul.f32.vlgmr.msra.gmra.mxu3 %v588_v1  ;;  %v133_v29 = vld [vmem:[#allocation2 + $0x318] sm:$0xff] }
  0x4a   :  { %366 = vmatpush.msrb.mxu2 %v56_v38  ;;  %345 = vmatpush.msrb.mxu1 %v187_v41  ;;  %v201_v30 = vld [vmem:[#allocation2 + $0x538] sm:$0xff] }
  0x4b   :  { %326 = vmatpush.msrb.mxu0 %v119_v40  ;;  %456 = vmatpush.msra.mxu3 %v225_v4  ;;  %v73_v32 = vld [vmem:[#allocation2 + $0x138] sm:$0xff] }
  0x4c   :  { %367 = vmatpush.msrb.mxu2 %v52_v42  ;;  %346 = vmatpush.msrb.mxu1 %v183_v45  ;;  %v129_v33 = vld [vmem:[#allocation2 + $0x2f8] sm:$0xff] }
  0x4d   :  { %327 = vmatpush.msrb.mxu0 %v115_v44  ;;  %272 = vmatmul.f32.vlgmr.msra.gmra.mxu1 %v596_v7  ;;  %v197_v34 = vld [vmem:[#allocation2 + $0x518] sm:$0xff] }
  0x4e   :  { %368 = vmatpush.msrb.mxu2 %v48_v46  ;;  %347 = vmatpush.msrb.mxu1 %v179_v49  ;;  %v69_v36 = vld [vmem:[#allocation2 + $0x118] sm:$0xff] }
  0x4f   :  { %328 = vmatpush.msrb.mxu0 %v111_v48  ;;  %457 = vmatpush.msra.mxu3 %v221_v10  ;;  %v125_v37 = vld [vmem:[#allocation2 + $0x2d8] sm:$0xff] }
  0x50   :  { %369 = vmatpush.msrb.mxu2 %v44_v50  ;;  %348 = vmatpush.msrb.mxu1 %v175_v53  ;;  %v193_v38 = vld [vmem:[#allocation2 + $0x4f8] sm:$0xff] }
  0x51   :  { %329 = vmatpush.msrb.mxu0 %v107_v52  ;;  %458 = vmatpush.msra.mxu3 %v217_v14  ;;  %v65_v40 = vld [vmem:[#allocation2 + $0xf8] sm:$0xff] }
  0x52   :  { %370 = vmatpush.msrb.mxu2 %v40_v54  ;;  %349 = vmatpush.msrb.mxu1 %v171_v57  ;;  %v121_v41 = vld [vmem:[#allocation2 + $0x2b8] sm:$0xff] }
  0x53   :  { %330 = vmatpush.msrb.mxu0 %v103_v56  ;;  %459 = vmatpush.msra.mxu3 %v213_v18  ;;  %v189_v42 = vld [vmem:[#allocation2 + $0x4d8] sm:$0xff] }
  0x54   :  { %371 = vmatpush.msrb.mxu2 %v36_v58  ;;  %350 = vmatpush.msrb.mxu1 %v167_v63  ;;  %v61_v44 = vld [vmem:[#allocation2 + $0xd8] sm:$0xff] }
  0x55   :  { %331 = vmatpush.msrb.mxu0 %v99_v61  ;;  %460 = vmatpush.msra.mxu3 %v209_v22  ;;  %v117_v45 = vld [vmem:[#allocation2 + $0x298] sm:$0xff] }
  0x56   :  { %436 = vmatpush.msra.mxu2 %v161_v62  ;;  %252 = vmatmul.f32.vlgmr.msra.gmra.mxu0 %v588_v1  ;;  %v185_v46 = vld [vmem:[#allocation2 + $0x4b8] sm:$0xff] }
  0x57   :  { %396 = vmatpush.msra.mxu0 %v224_v2  ;;  %351 = vmatpush.msrb.mxu1 %v163_v5  ;;  %v57_v48 = vld [vmem:[#allocation2 + $0xb8] sm:$0xff]  ;;  %v226_v5 = vld [vmem:[%s615_s2] sm:$0xf]  ;;  %s556_s2 = smov [#allocation5]  }
  0x58   :  { %437 = vmatpush.msra.mxu2 %v157_v3  ;;  %352 = vmatmul.f32.vlgmr.msrb.gmra.mxu1 %v583_v60  ;;  %v113_v49 = vld [vmem:[#allocation2 + $0x278] sm:$0xff]  ;;  %s485_s25 = sshll.u32 %s556_s2, 4  ;;  %s486_s25 = int_to_ptr.vmem [resolvable:$true] %s485_s25 }
  0x59   :  { %397 = vmatpush.msra.mxu0 %v220_v6  ;;  %416 = vmatpush.msra.mxu1 %v97_v9  ;;  %v181_v50 = vld [vmem:[#allocation2 + $0x498] sm:$0xff]  ;;  %v228_v6 = vperm.slane %v226_v5, 0 }
  0x5a   :  { %438 = vmatpush.msra.mxu2 %v153_v8  ;;  %461 = vmatpush.msra.mxu3 %v205_v26  ;;  %v53_v52 = vld [vmem:[#allocation2 + $0x98] sm:$0xff] }
  0x5b   :  { %398 = vmatpush.msra.mxu0 %v216_v11  ;;  %417 = vmatpush.msra.mxu1 %v93_v13  ;;  %v109_v53 = vld [vmem:[#allocation2 + $0x258] sm:$0xff]  ;;  %v229_v11 = vperm.slane %v226_v5, 1 }
  0x5c   :  { %439 = vmatpush.msra.mxu2 %v149_v12  ;;  %462 = vmatpush.msra.mxu3 %v201_v30  ;;  %v177_v54 = vld [vmem:[#allocation2 + $0x478] sm:$0xff] }
  0x5d   :  { %399 = vmatpush.msra.mxu0 %v212_v15  ;;  %418 = vmatpush.msra.mxu1 %v89_v17  ;;  %v49_v56 = vld [vmem:[#allocation2 + $0x78] sm:$0xff] }
  0x5e   :  { %440 = vmatpush.msra.mxu2 %v145_v16  ;;  %332 = vmatmul.f32.vlgmr.msrb.gmra.mxu0 %v596_v7  ;;  %v105_v57 = vld [vmem:[#allocation2 + $0x238] sm:$0xff] }
  0x5f   :  { %400 = vmatpush.msra.mxu0 %v208_v20  ;;  %419 = vmatpush.msra.mxu1 %v85_v21  ;;  %v173_v58 = vld [vmem:[#allocation2 + $0x458] sm:$0xff] }
  0x60   :  { %441 = vmatpush.msra.mxu2 %v141_v19  ;;  %463 = vmatpush.msra.mxu3 %v197_v34  ;;  %v45_v61 = vld [vmem:[#allocation2 + $0x58] sm:$0xff] }
  0x61   :  { %401 = vmatpush.msra.mxu0 %v204_v23  ;;  %420 = vmatpush.msra.mxu1 %v81_v24  ;;  %v101_v62 = vld [vmem:[#allocation2 + $0x218] sm:$0xff]  ;;  %v231_v23 = vperm.slane %v226_v5, 3 }
  0x62   :  { %442 = vmatpush.msra.mxu2 %v137_v25  ;;  %464 = vmatpush.msra.mxu3 %v193_v38  ;;  %v169_v63 = vld [vmem:[#allocation2 + $0x438] sm:$0xff] }
  0x63   :  { %402 = vmatpush.msra.mxu0 %v200_v27  ;;  %421 = vmatpush.msra.mxu1 %v77_v28  ;;  %v41_v2 = vld [vmem:[#allocation2 + $0x38] sm:$0xff] }
  0x64   :  { %443 = vmatpush.msra.mxu2 %v133_v29  ;;  %465 = vmatpush.msra.mxu3 %v189_v42  ;;  %v165_v3 = vld [vmem:[#allocation2 + $0x418] sm:$0xff] }
  0x65   :  { %403 = vmatpush.msra.mxu0 %v196_v31  ;;  %422 = vmatpush.msra.mxu1 %v73_v32  ;;  %v37_v4 = vld [vmem:[#allocation2 + $0x18] sm:$0xff] }
  0x66   :  { %444 = vmatpush.msra.mxu2 %v129_v33  ;;  %466 = vmatpush.msra.mxu3 %v185_v46 }
  0x67   :  { %404 = vmatpush.msra.mxu0 %v192_v35  ;;  %423 = vmatpush.msra.mxu1 %v69_v36 }
  0x68   :  { %445 = vmatpush.msra.mxu2 %v125_v37  ;;  %467 = vmatpush.msra.mxu3 %v181_v50 }
  0x69   :  { %405 = vmatpush.msra.mxu0 %v188_v39  ;;  %424 = vmatpush.msra.mxu1 %v65_v40 }
  0x6a   :  { %446 = vmatpush.msra.mxu2 %v121_v41  ;;  %392 = vmatmul.f32.vlgmr.msrb.gmra.mxu3 %v596_v7 }
  0x6b   :  { %406 = vmatpush.msra.mxu0 %v184_v43  ;;  %425 = vmatpush.msra.mxu1 %v61_v44 }
  0x6c   :  { %447 = vmatpush.msra.mxu2 %v117_v45  ;;  %468 = vmatpush.msra.mxu3 %v177_v54 }
  0x6d   :  { %372 = vmatmul.f32.vlgmr.msrb.gmra.mxu2 %v588_v1  ;;  %407 = vmatpush.msra.mxu0 %v180_v47 }
  0x6e   :  { %426 = vmatpush.msra.mxu1 %v57_v48  ;;  %448 = vmatpush.msra.mxu2 %v113_v49 }
  0x6f   :  { %408 = vmatpush.msra.mxu0 %v176_v51  ;;  %469 = vmatpush.msra.mxu3 %v173_v58 }
  0x70   :  { %427 = vmatpush.msra.mxu1 %v53_v52  ;;  %449 = vmatpush.msra.mxu2 %v109_v53 }
  0x71   :  { %409 = vmatpush.msra.mxu0 %v172_v55  ;;  %470 = vmatpush.msra.mxu3 %v169_v63 }
  0x72   :  { %428 = vmatpush.msra.mxu1 %v49_v56  ;;  %450 = vmatpush.msra.mxu2 %v105_v57 }
  0x73   :  { %410 = vmatpush.msra.mxu0 %v168_v59  ;;  %471 = vmatpush.msra.mxu3 %v165_v3 }
  0x74   :  { %429 = vmatpush.msra.mxu1 %v45_v61  ;;  %451 = vmatpush.msra.mxu2 %v101_v62 }
  0x75   :  { %452 = vmatmul.f32.vlgmr.msra.gmra.mxu2 %v596_v7  ;;  %411 = vmatpush.msra.mxu0 %v164_v0 }
  0x76   :  { %430 = vmatpush.msra.mxu1 %v41_v2  ;;  %412 = vmatmul.f32.vlgmr.msra.gmra.mxu0 %v583_v60 }
  0x77   :  { %472 = vmatmul.f32.vlgmr.msra.gmra.mxu3 %v583_v60 }
  0x78   :  { %431 = vmatpush.msra.mxu1 %v37_v4 }
  0x79   :  { %432 = vmatmul.f32.vlgmr.msra.gmra.mxu1 %v588_v1  ;;  %v230_v1 = vperm.slane %v226_v5, 2 }
  0xb8   :  { %v293_v7 = vpop.f32.mrf.mxu2 }
  0xca   :  { %v273_v10 = vpop.f32.mrf.mxu1 }
  0xcc   :  { %v313_v14 = vpop.f32.mrf.mxu3 }
  0xcd   :  { %v314_v15 = vadd.f32 %v313_v14, %v229_v11 }
  0xd3   :  { %v253_v8 = vpop.f32.mrf.mxu0 }
  0xd4   :  { %v254_v9 = vadd.f32 %v253_v8, %v228_v6 }
  0xd5   :  { %v353_v17 = vpop.f32.mrf.mxu1 }
  0xd6   :  { %v274_v12 = vadd.f32 %v273_v10, %v254_v9 }
  0xd8   :  { %v294_v13 = vadd.f32 %v293_v7, %v274_v12 }
  0xda   :  { %476 = vst [vmem:[#allocation5] sm:$0xff] %v294_v13 }
  0xdb   :  { %v333_v16 = vpop.f32.mrf.mxu0 }
  0xdc   :  { %v334_v60 = vadd.f32 %v333_v16, %v314_v15 }
  0xde   :  { %v354_v18 = vadd.f32 %v353_v17, %v334_v60 }
  0xe0   :  { %477 = vst [vmem:[#allocation5 + $0x8] sm:$0xff] %v354_v18 }
  0xed   :  { %v393_v21 = vpop.f32.mrf.mxu3 }
  0xf0   :  { %v373_v19 = vpop.f32.mrf.mxu2 }
  0xf1   :  { %v374_v20 = vadd.f32 %v373_v19, %v230_v1 }
  0xf3   :  { %v394_v22 = vadd.f32 %v393_v21, %v374_v20  ;;  %v413_v24 = vpop.f32.mrf.mxu0 }
  0xf5   :  { %v414_v25 = vadd.f32 %v413_v24, %v394_v22 }
  0xf6   :  { %v433_v26 = vpop.f32.mrf.mxu1 }
  0xf7   :  { %478 = vst [vmem:[#allocation5 + $0x10] sm:$0xff] %v414_v25  ;;  %v434_v27 = vadd.f32 %v433_v26, %v231_v23 }
  0xf8   :  { %v453_v28 = vpop.f32.mrf.mxu2 }
  0xf9   :  { %v454_v29 = vadd.f32 %v453_v28, %v434_v27 }
  0xfa   :  { %v473_v30 = vpop.f32.mrf.mxu3 }
  0xfb   :  { %v474_v31 = vadd.f32 %v473_v30, %v454_v29 }
  0xfd   :  { %479 = vst [vmem:[#allocation5 + $0x18] sm:$0xff] %v474_v31 }
  0xfe   :  { %490 = dma.vmem_to_hbm [thread:$0]  %s486_s25, 512, %s488_s28, [#allocation4]  }
  0xff   :  { %551 = dma.done.wait [#allocation4], 512  }
 0x100   :  { %552 = vsyncadd [#allocation4], 4294966784 }
 0x101   :  { %495 = vsyncpa [#allocation3], 1 }
 0x102   :  { %496 = vsyncpa [#allocation4], 1 }

</bundles_post_ra>
